<compile_context>
chip_gen: v5e
topology: v5e:2x2
jax: 0.10.0
libtpu: 0.0.40
codegen_flags: <defaults>
</compile_context>

<pallas_src>
import functools

import jax
import jax.numpy as jnp
from jax.experimental import pallas as pl
from jax.experimental.pallas import tpu as pltpu

LN_EPS = 1e-5
LEAKY_SLOPE = 0.01
PROB_EPS = 1e-8
LANE = 128
SUBLANE = 8
NEG_BIG = -1e30   # baked into padded fc3 bias lanes -> exp underflows to 0


def _round_up(x, m):
    return (x + m - 1) // m * m


# ------------------------------- kernel -----------------------------------

def _actor_kernel(obs_ref,
                  w1_ref, b1_ref, g1_ref, be1_ref,
                  w2_ref, b2_ref, g2_ref, be2_ref,
                  w3_ref, b3_ref,
                  out_ref, *, action_dim, ew_dtype):
    """Fused fc1 -> LN -> lrelu -> fc2 -> LN -> lrelu -> fc3 -> softmax(+eps)."""

    def ln_act(h, gamma_ref, beta_ref):
        # LN statistics in f32 via two independent lane reductions.
        mu = jnp.mean(h, axis=-1, keepdims=True)
        ms = jnp.mean(h * h, axis=-1, keepdims=True)
        var = jnp.maximum(ms - mu * mu, 0.0)
        hn = ((h - mu) * jax.lax.rsqrt(var + LN_EPS)).astype(ew_dtype)
        # Affine + leaky_relu in ew_dtype (bf16 on v6e/v7x -> 2x packed VPU);
        # the result feeds the next MXU input as bf16 anyway.
        y = hn * gamma_ref[...].astype(ew_dtype) + beta_ref[...].astype(ew_dtype)
        y = jnp.where(y >= 0, y, LEAKY_SLOPE * y)
        return y.astype(jnp.bfloat16)

    x = obs_ref[...].astype(jnp.bfloat16)                        # [TB, obs_dim]

    # fc1 + ln1 + leaky_relu (bf16 MXU inputs, f32 accumulation)
    h1 = jnp.dot(x, w1_ref[...], preferred_element_type=jnp.float32) + b1_ref[...]
    h1 = ln_act(h1, g1_ref, be1_ref)

    # fc2 + ln2 + leaky_relu
    h2 = jnp.dot(h1, w2_ref[...], preferred_element_type=jnp.float32) + b2_ref[...]
    h2 = ln_act(h2, g2_ref, be2_ref)

    # fc3 over lane-dense padded columns. Padded lanes carry a -1e30 bias so
    # exp(logits - m) is exactly 0 there -> no runtime mask / iota / where.
    logits = jnp.dot(h2, w3_ref[...], preferred_element_type=jnp.float32) + b3_ref[...]

    m = jnp.max(logits, axis=-1, keepdims=True)
    e = jnp.exp(logits - m)
    z = jnp.sum(e, axis=-1, keepdims=True)

    # Original tail:  p = e/z ; p += 1e-8 ; p /= p.sum()
    # Folded:         p = (e + eps*z) / (z * (1 + eps*action_dim))
    denom = z * (1.0 + PROB_EPS * action_dim)
    inv = pl.reciprocal(denom, approx=True)
    inv = inv * (2.0 - denom * inv)           # one Newton step -> near-exact rows
    p = (e + PROB_EPS * z) * inv

    # Store only the real action columns (narrow output block).
    out_ref[...] = p[:, :action_dim].astype(out_ref.dtype)


# ------------------------------- wrapper -----------------------------------

def _default_elementwise_dtype():
    """bf16 elementwise on bf16-VALU generations (v6e/v7x), f32 otherwise (v5e)."""
    try:
        kind = jax.devices()[0].device_kind.lower()
    except Exception:
        return jnp.float32
    if "v6" in kind or "v7" in kind:
        return jnp.bfloat16
    return jnp.float32


def actor_forward(obs, packed_params, obs_dim, action_dim, tile_b=1024,
                  elementwise_dtype=None):
    """obs: [..., obs_dim] float32 -> action probabilities [B, action_dim] f32."""
    (w1, b1, g1, be1, w2, b2, g2, be2, w3, b3) = packed_params
    h1_dim = w1.shape[1]
    h2_dim = w2.shape[1]
    act_pad = w3.shape[1]

    if elementwise_dtype is None:
        elementwise_dtype = _default_elementwise_dtype()

    x = obs.reshape(-1, obs_dim).astype(jnp.float32)             # obs.view(-1, obs_dim)
    batch = x.shape[0]

    # Batch tiling: big tiles amortize the ~0.35us/step pipeline overhead, but
    # keep >=2 grid steps (when the batch allows) so the "parallel" axis can
    # span both v7x TensorCores.
    tile_b = int(tile_b)
    b_aligned = _round_up(batch, SUBLANE)
    if b_aligned >= 2 * SUBLANE:
        half = _round_up((b_aligned + 1) // 2, SUBLANE)
        tile_b = min(tile_b, half)
    tile_b = max(SUBLANE, min(tile_b, b_aligned))
    b_pad = _round_up(batch, tile_b)
    if b_pad != batch:
        x = jnp.pad(x, ((0, b_pad - batch), (0, 0)))

    kernel = functools.partial(_actor_kernel, action_dim=action_dim,
                               ew_dtype=elementwise_dtype)

    def resident(arr):
        # Same block at every grid step -> stays VMEM-resident across the grid.
        return pl.BlockSpec(arr.shape, lambda i: (0, 0))

    weight_bytes = (w1.size + w2.size + w3.size) * 2 + \
                   (b1.size + g1.size + be1.size + b2.size + g2.size + be2.size
                    + b3.size) * 4
    cost = pl.CostEstimate(
        flops=2 * b_pad * (obs_dim * h1_dim + h1_dim * h2_dim + h2_dim * act_pad),
        transcendentals=b_pad * (act_pad + 3),
        bytes_accessed=b_pad * (obs_dim + action_dim) * 4 + weight_bytes,
    )

    out = pl.pallas_call(
        kernel,
        out_shape=jax.ShapeDtypeStruct((b_pad, action_dim), jnp.float32),
        grid=(b_pad // tile_b,),
        in_specs=[
            pl.BlockSpec((tile_b, obs_dim), lambda i: (i, 0)),   # streamed obs tiles
            resident(w1), resident(b1), resident(g1), resident(be1),
            resident(w2), resident(b2), resident(g2), resident(be2),
            resident(w3), resident(b3),
        ],
        out_specs=pl.BlockSpec((tile_b, action_dim), lambda i: (i, 0)),
        compiler_params=pltpu.CompilerParams(
            dimension_semantics=("parallel",),
            vmem_limit_bytes=32 * 1024 * 1024),
        cost_estimate=cost,
    )(x, w1, b1, g1, be1, w2, b2, g2, be2, w3, b3)

    return out[:batch]


# ----------------------------- parameters ---------------------------------

def kaiming_uniform_transposed(key, fan_in, fan_out, a=0.01):
    # PyTorch kaiming_uniform_(a=0.01, nonlinearity='leaky_relu'), stored [in, out].
    gain = jnp.sqrt(2.0 / (1.0 + a * a))
    bound = gain * jnp.sqrt(3.0 / fan_in)
    return jax.random.uniform(key, (fan_in, fan_out), jnp.float32, -bound, bound)


def init_actor_params(key, obs_dim, action_dim):
    k1, k2, k3 = jax.random.split(key, 3)
    w1 = kaiming_uniform_transposed(k1, obs_dim, 256)
    b1 = jnp.zeros((1, 256), jnp.float32)
    g1 = jnp.ones((1, 256), jnp.float32)
    be1 = jnp.zeros((1, 256), jnp.float32)
    w2 = kaiming_uniform_transposed(k2, 256, 128)
    b2 = jnp.zeros((1, 128), jnp.float32)
    g2 = jnp.ones((1, 128), jnp.float32)
    be2 = jnp.zeros((1, 128), jnp.float32)
    w3 = kaiming_uniform_transposed(k3, 128, action_dim)
    b3 = jnp.zeros((1, action_dim), jnp.float32)
    return (w1, b1, g1, be1, w2, b2, g2, be2, w3, b3)


def pack_actor_params(params):
    """Cast matmul weights to bf16; pad only fc3 columns to lane width, baking
    -1e30 into the padded bias lanes so the kernel needs no softmax mask."""
    (w1, b1, g1, be1, w2, b2, g2, be2, w3, b3) = params
    obs_dim = w1.shape[0]
    h2_dim, action_dim = w3.shape
    act_pad = _round_up(action_dim, LANE)

    w3p = jnp.zeros((h2_dim, act_pad), jnp.float32).at[:, :action_dim].set(w3)
    b3p = jnp.full((1, act_pad), NEG_BIG, jnp.float32).at[:, :action_dim].set(b3)

    packed = (w1.astype(jnp.bfloat16), b1, g1, be1,
              w2.astype(jnp.bfloat16), b2, g2, be2,
              w3p.astype(jnp.bfloat16), b3p)
    return packed, obs_dim, action_dim


# ----------------------------- reference ----------------------------------

def actor_reference(obs, params):
    """Pure-JAX reference mirroring the kernel's bf16-weight / f32-accum math."""
    (w1, b1, g1, be1, w2, b2, g2, be2, w3, b3) = params

    def ln(h, g, b):
        mu = jnp.mean(h, axis=-1, keepdims=True)
        var = jnp.mean((h - mu) ** 2, axis=-1, keepdims=True)
        return (h - mu) / jnp.sqrt(var + LN_EPS) * g + b

    def lrelu(h):
        return jnp.where(h >= 0, h, LEAKY_SLOPE * h)

    x = obs.reshape(-1, w1.shape[0]).astype(jnp.float32)
    h1 = lrelu(ln(jnp.dot(x.astype(jnp.bfloat16), w1.astype(jnp.bfloat16),
                          preferred_element_type=jnp.float32) + b1, g1, be1))
    h2 = lrelu(ln(jnp.dot(h1.astype(jnp.bfloat16), w2.astype(jnp.bfloat16),
                          preferred_element_type=jnp.float32) + b2, g2, be2))
    logits = jnp.dot(h2.astype(jnp.bfloat16), w3.astype(jnp.bfloat16),
                     preferred_element_type=jnp.float32) + b3
    logits = logits - jnp.max(logits, axis=-1, keepdims=True)
    p = jnp.exp(logits)
    p = p / jnp.sum(p, axis=-1, keepdims=True)
    p = p + PROB_EPS
    return p / jnp.sum(p, axis=-1, keepdims=True)


# --------------------------------- test ------------------------------------

def _check(probs, obs, params, action_dim):
    batch = obs.reshape(-1, params[0].shape[0]).shape[0]
    assert probs.shape == (batch, action_dim)
    assert bool(jnp.all(jnp.isfinite(probs)))
    assert bool(jnp.all(probs > 0.0))
    assert bool(jnp.all(jnp.abs(jnp.sum(probs, axis=-1) - 1.0) < 1e-4))
    ref = actor_reference(obs, params)
    assert bool(jnp.max(jnp.abs(probs - ref)) < 5e-3)


if __name__ == "__main__":
    key = jax.random.PRNGKey(0)
    k_obs1, k_obs2, k_params = jax.random.split(key, 3)

    OBS_DIM, ACTION_DIM = 32, 8
    params = init_actor_params(k_params, OBS_DIM, ACTION_DIM)
    packed, obs_dim, action_dim = pack_actor_params(params)

    # Case 1: small batch, single grid step.
    obs1 = jax.random.normal(k_obs1, (8, OBS_DIM), jnp.float32)
    probs1 = jax.block_until_ready(actor_forward(obs1, packed, obs_dim, action_dim))
    _check(probs1, obs1, params, ACTION_DIM)

    # Case 2: non-divisible batch -> exercises row padding + multi-step grid.
    obs2 = jax.random.normal(k_obs2, (24, OBS_DIM), jnp.float32)
    probs2 = jax.block_until_ready(actor_forward(obs2, packed, obs_dim, action_dim))
    _check(probs2, obs2, params, ACTION_DIM)

    print("KERNEL_OK")
</pallas_src>

<mosaic_0001>
module attributes {stable_mosaic.version = 11 : i64} {
  func.func @_actor_kernel(%arg0: i32, %arg1: memref<8x32xf32, #tpu.memory_space<vmem>>, %arg2: memref<32x256xbf16, #tpu.memory_space<vmem>>, %arg3: memref<1x256xf32, #tpu.memory_space<vmem>>, %arg4: memref<1x256xf32, #tpu.memory_space<vmem>>, %arg5: memref<1x256xf32, #tpu.memory_space<vmem>>, %arg6: memref<256x128xbf16, #tpu.memory_space<vmem>>, %arg7: memref<1x128xf32, #tpu.memory_space<vmem>>, %arg8: memref<1x128xf32, #tpu.memory_space<vmem>>, %arg9: memref<1x128xf32, #tpu.memory_space<vmem>>, %arg10: memref<128x128xbf16, #tpu.memory_space<vmem>>, %arg11: memref<1x128xf32, #tpu.memory_space<vmem>>, %arg12: memref<8x8xf32, #tpu.memory_space<vmem>>) attributes {dimension_semantics = [#tpu.dimension_semantics<parallel>], iteration_bounds = array<i64: 1>, scalar_prefetch = 0 : i64, scratch_operands = 0 : i64, tpu.core_type = #tpu.core_type<tc>, window_params = [{transform_indices = @transform_0, window_bounds = array<i64: 8, 32>}, {pipeline_mode = #tpu.pipeline_mode<synchronous>, transform_indices = @transform_1, window_bounds = array<i64: 32, 256>}, {pipeline_mode = #tpu.pipeline_mode<synchronous>, transform_indices = @transform_2, window_bounds = array<i64: 1, 256>}, {pipeline_mode = #tpu.pipeline_mode<synchronous>, transform_indices = @transform_3, window_bounds = array<i64: 1, 256>}, {pipeline_mode = #tpu.pipeline_mode<synchronous>, transform_indices = @transform_4, window_bounds = array<i64: 1, 256>}, {pipeline_mode = #tpu.pipeline_mode<synchronous>, transform_indices = @transform_5, window_bounds = array<i64: 256, 128>}, {pipeline_mode = #tpu.pipeline_mode<synchronous>, transform_indices = @transform_6, window_bounds = array<i64: 1, 128>}, {pipeline_mode = #tpu.pipeline_mode<synchronous>, transform_indices = @transform_7, window_bounds = array<i64: 1, 128>}, {pipeline_mode = #tpu.pipeline_mode<synchronous>, transform_indices = @transform_8, window_bounds = array<i64: 1, 128>}, {pipeline_mode = #tpu.pipeline_mode<synchronous>, transform_indices = @transform_9, window_bounds = array<i64: 128, 128>}, {pipeline_mode = #tpu.pipeline_mode<synchronous>, transform_indices = @transform_10, window_bounds = array<i64: 1, 128>}, {transform_indices = @transform_11, window_bounds = array<i64: 8, 8>}]} {
    %c0 = arith.constant 0 : index
    %c0_0 = arith.constant 0 : index
    %0 = vector.load %arg1[%c0, %c0_0] : memref<8x32xf32, #tpu.memory_space<vmem>>, vector<8x32xf32>
    %1 = arith.truncf %0 : vector<8x32xf32> to vector<8x32xbf16>
    %c0_1 = arith.constant 0 : index
    %c0_2 = arith.constant 0 : index
    %2 = vector.load %arg2[%c0_1, %c0_2] : memref<32x256xbf16, #tpu.memory_space<vmem>>, vector<32x256xbf16>
    %cst = arith.constant dense<0.000000e+00> : vector<8x256xf32>
    %3 = tpu.matmul %1, %2, %cst {dimension_numbers = #tpu.dot_dimension_numbers<[1], [0], [0], [1], [0, 0, 1, 1], [], []>} : vector<8x32xbf16>, vector<32x256xbf16>, vector<8x256xf32> -> vector<8x256xf32>
    %c0_3 = arith.constant 0 : index
    %c0_4 = arith.constant 0 : index
    %4 = vector.load %arg3[%c0_3, %c0_4] : memref<1x256xf32, #tpu.memory_space<vmem>>, vector<1x256xf32>
    %5 = vector.broadcast %4 : vector<1x256xf32> to vector<8x256xf32>
    %6 = arith.addf %3, %5 : vector<8x256xf32>
    %cst_5 = arith.constant dense<0.000000e+00> : vector<8xf32>
    %7 = vector.multi_reduction <add>, %6, %cst_5 [1] : vector<8x256xf32> to vector<8xf32>
    %8 = vector.shape_cast %7 : vector<8xf32> to vector<8x1xf32>
    %cst_6 = arith.constant 2.560000e+02 : f32
    %9 = vector.broadcast %cst_6 : f32 to vector<8x1xf32>
    %10 = arith.divf %8, %9 : vector<8x1xf32>
    %11 = arith.mulf %6, %6 : vector<8x256xf32>
    %cst_7 = arith.constant dense<0.000000e+00> : vector<8xf32>
    %12 = vector.multi_reduction <add>, %11, %cst_7 [1] : vector<8x256xf32> to vector<8xf32>
    %13 = vector.shape_cast %12 : vector<8xf32> to vector<8x1xf32>
    %cst_8 = arith.constant 2.560000e+02 : f32
    %14 = vector.broadcast %cst_8 : f32 to vector<8x1xf32>
    %15 = arith.divf %13, %14 : vector<8x1xf32>
    %16 = arith.mulf %10, %10 : vector<8x1xf32>
    %17 = arith.subf %15, %16 : vector<8x1xf32>
    %cst_9 = arith.constant 0.000000e+00 : f32
    %18 = vector.broadcast %cst_9 : f32 to vector<8x1xf32>
    %19 = arith.maximumf %17, %18 : vector<8x1xf32>
    %20 = vector.broadcast %10 : vector<8x1xf32> to vector<8x256xf32>
    %21 = arith.subf %6, %20 : vector<8x256xf32>
    %cst_10 = arith.constant 9.99999974E-6 : f32
    %22 = vector.broadcast %cst_10 : f32 to vector<8x1xf32>
    %23 = arith.addf %19, %22 : vector<8x1xf32>
    %24 = math.rsqrt %23 : vector<8x1xf32>
    %25 = vector.broadcast %24 : vector<8x1xf32> to vector<8x256xf32>
    %26 = arith.mulf %21, %25 : vector<8x256xf32>
    %c0_11 = arith.constant 0 : index
    %c0_12 = arith.constant 0 : index
    %27 = vector.load %arg4[%c0_11, %c0_12] : memref<1x256xf32, #tpu.memory_space<vmem>>, vector<1x256xf32>
    %28 = vector.broadcast %27 : vector<1x256xf32> to vector<8x256xf32>
    %29 = arith.mulf %26, %28 : vector<8x256xf32>
    %c0_13 = arith.constant 0 : index
    %c0_14 = arith.constant 0 : index
    %30 = vector.load %arg5[%c0_13, %c0_14] : memref<1x256xf32, #tpu.memory_space<vmem>>, vector<1x256xf32>
    %31 = vector.broadcast %30 : vector<1x256xf32> to vector<8x256xf32>
    %32 = arith.addf %29, %31 : vector<8x256xf32>
    %cst_15 = arith.constant 0.000000e+00 : f32
    %33 = vector.broadcast %cst_15 : f32 to vector<8x256xf32>
    %34 = arith.cmpf oge, %32, %33 : vector<8x256xf32>
    %cst_16 = arith.constant 0.00999999977 : f32
    %35 = vector.broadcast %cst_16 : f32 to vector<8x256xf32>
    %36 = arith.mulf %35, %32 : vector<8x256xf32>
    %37 = arith.select %34, %32, %36 : vector<8x256xi1>, vector<8x256xf32>
    %38 = arith.truncf %37 : vector<8x256xf32> to vector<8x256xbf16>
    %c0_17 = arith.constant 0 : index
    %c0_18 = arith.constant 0 : index
    %39 = vector.load %arg6[%c0_17, %c0_18] : memref<256x128xbf16, #tpu.memory_space<vmem>>, vector<256x128xbf16>
    %cst_19 = arith.constant dense<0.000000e+00> : vector<8x128xf32>
    %40 = tpu.matmul %38, %39, %cst_19 {dimension_numbers = #tpu.dot_dimension_numbers<[1], [0], [0], [1], [0, 0, 1, 1], [], []>} : vector<8x256xbf16>, vector<256x128xbf16>, vector<8x128xf32> -> vector<8x128xf32>
    %c0_20 = arith.constant 0 : index
    %c0_21 = arith.constant 0 : index
    %41 = vector.load %arg7[%c0_20, %c0_21] : memref<1x128xf32, #tpu.memory_space<vmem>>, vector<1x128xf32>
    %42 = vector.broadcast %41 : vector<1x128xf32> to vector<8x128xf32>
    %43 = arith.addf %40, %42 : vector<8x128xf32>
    %cst_22 = arith.constant dense<0.000000e+00> : vector<8xf32>
    %44 = vector.multi_reduction <add>, %43, %cst_22 [1] : vector<8x128xf32> to vector<8xf32>
    %45 = vector.shape_cast %44 : vector<8xf32> to vector<8x1xf32>
    %cst_23 = arith.constant 1.280000e+02 : f32
    %46 = vector.broadcast %cst_23 : f32 to vector<8x1xf32>
    %47 = arith.divf %45, %46 : vector<8x1xf32>
    %48 = arith.mulf %43, %43 : vector<8x128xf32>
    %cst_24 = arith.constant dense<0.000000e+00> : vector<8xf32>
    %49 = vector.multi_reduction <add>, %48, %cst_24 [1] : vector<8x128xf32> to vector<8xf32>
    %50 = vector.shape_cast %49 : vector<8xf32> to vector<8x1xf32>
    %cst_25 = arith.constant 1.280000e+02 : f32
    %51 = vector.broadcast %cst_25 : f32 to vector<8x1xf32>
    %52 = arith.divf %50, %51 : vector<8x1xf32>
    %53 = arith.mulf %47, %47 : vector<8x1xf32>
    %54 = arith.subf %52, %53 : vector<8x1xf32>
    %cst_26 = arith.constant 0.000000e+00 : f32
    %55 = vector.broadcast %cst_26 : f32 to vector<8x1xf32>
    %56 = arith.maximumf %54, %55 : vector<8x1xf32>
    %57 = vector.broadcast %47 : vector<8x1xf32> to vector<8x128xf32>
    %58 = arith.subf %43, %57 : vector<8x128xf32>
    %cst_27 = arith.constant 9.99999974E-6 : f32
    %59 = vector.broadcast %cst_27 : f32 to vector<8x1xf32>
    %60 = arith.addf %56, %59 : vector<8x1xf32>
    %61 = math.rsqrt %60 : vector<8x1xf32>
    %62 = vector.broadcast %61 : vector<8x1xf32> to vector<8x128xf32>
    %63 = arith.mulf %58, %62 : vector<8x128xf32>
    %c0_28 = arith.constant 0 : index
    %c0_29 = arith.constant 0 : index
    %64 = vector.load %arg8[%c0_28, %c0_29] : memref<1x128xf32, #tpu.memory_space<vmem>>, vector<1x128xf32>
    %65 = vector.broadcast %64 : vector<1x128xf32> to vector<8x128xf32>
    %66 = arith.mulf %63, %65 : vector<8x128xf32>
    %c0_30 = arith.constant 0 : index
    %c0_31 = arith.constant 0 : index
    %67 = vector.load %arg9[%c0_30, %c0_31] : memref<1x128xf32, #tpu.memory_space<vmem>>, vector<1x128xf32>
    %68 = vector.broadcast %67 : vector<1x128xf32> to vector<8x128xf32>
    %69 = arith.addf %66, %68 : vector<8x128xf32>
    %cst_32 = arith.constant 0.000000e+00 : f32
    %70 = vector.broadcast %cst_32 : f32 to vector<8x128xf32>
    %71 = arith.cmpf oge, %69, %70 : vector<8x128xf32>
    %cst_33 = arith.constant 0.00999999977 : f32
    %72 = vector.broadcast %cst_33 : f32 to vector<8x128xf32>
    %73 = arith.mulf %72, %69 : vector<8x128xf32>
    %74 = arith.select %71, %69, %73 : vector<8x128xi1>, vector<8x128xf32>
    %75 = arith.truncf %74 : vector<8x128xf32> to vector<8x128xbf16>
    %c0_34 = arith.constant 0 : index
    %c0_35 = arith.constant 0 : index
    %76 = vector.load %arg10[%c0_34, %c0_35] : memref<128x128xbf16, #tpu.memory_space<vmem>>, vector<128x128xbf16>
    %cst_36 = arith.constant dense<0.000000e+00> : vector<8x128xf32>
    %77 = tpu.matmul %75, %76, %cst_36 {dimension_numbers = #tpu.dot_dimension_numbers<[1], [0], [0], [1], [0, 0, 1, 1], [], []>} : vector<8x128xbf16>, vector<128x128xbf16>, vector<8x128xf32> -> vector<8x128xf32>
    %c0_37 = arith.constant 0 : index
    %c0_38 = arith.constant 0 : index
    %78 = vector.load %arg11[%c0_37, %c0_38] : memref<1x128xf32, #tpu.memory_space<vmem>>, vector<1x128xf32>
    %79 = vector.broadcast %78 : vector<1x128xf32> to vector<8x128xf32>
    %80 = arith.addf %77, %79 : vector<8x128xf32>
    %cst_39 = arith.constant dense<0xFF800000> : vector<8xf32>
    %81 = vector.multi_reduction <maximumf>, %80, %cst_39 [1] : vector<8x128xf32> to vector<8xf32>
    %82 = vector.shape_cast %81 : vector<8xf32> to vector<8x1xf32>
    %83 = vector.broadcast %82 : vector<8x1xf32> to vector<8x128xf32>
    %84 = arith.subf %80, %83 : vector<8x128xf32>
    %85 = math.exp %84 : vector<8x128xf32>
    %cst_40 = arith.constant dense<0.000000e+00> : vector<8xf32>
    %86 = vector.multi_reduction <add>, %85, %cst_40 [1] : vector<8x128xf32> to vector<8xf32>
    %87 = vector.shape_cast %86 : vector<8xf32> to vector<8x1xf32>
    %cst_41 = arith.constant 1.00000012 : f32
    %88 = vector.broadcast %cst_41 : f32 to vector<8x1xf32>
    %89 = arith.mulf %87, %88 : vector<8x1xf32>
    %90 = tpu.reciprocal %89 {approx = true} : vector<8x1xf32> -> vector<8x1xf32>
    %91 = arith.mulf %89, %90 : vector<8x1xf32>
    %cst_42 = arith.constant 2.000000e+00 : f32
    %92 = vector.broadcast %cst_42 : f32 to vector<8x1xf32>
    %93 = arith.subf %92, %91 : vector<8x1xf32>
    %94 = arith.mulf %90, %93 : vector<8x1xf32>
    %cst_43 = arith.constant 9.99999993E-9 : f32
    %95 = vector.broadcast %cst_43 : f32 to vector<8x1xf32>
    %96 = arith.mulf %95, %87 : vector<8x1xf32>
    %97 = vector.broadcast %96 : vector<8x1xf32> to vector<8x128xf32>
    %98 = arith.addf %85, %97 : vector<8x128xf32>
    %99 = vector.broadcast %94 : vector<8x1xf32> to vector<8x128xf32>
    %100 = arith.mulf %98, %99 : vector<8x128xf32>
    %101 = vector.extract_strided_slice %100 {offsets = [0, 0], sizes = [8, 8], strides = [1, 1]} : vector<8x128xf32> to vector<8x8xf32>
    %c0_44 = arith.constant 0 : index
    %c0_45 = arith.constant 0 : index
    %102 = vector.load %arg12[%c0_44, %c0_45] : memref<8x8xf32, #tpu.memory_space<vmem>>, vector<8x8xf32>
    tpu.vector_store %arg12[%c0_44, %c0_45], %101 {strides = array<i32>} : memref<8x8xf32, #tpu.memory_space<vmem>>, vector<8x8xf32>,
    return
  }
  func.func @transform_0(%arg0: i32) -> (i32, i32) {
    %c0_i32 = arith.constant 0 : i32
    %c0_i32_0 = arith.constant 0 : i32
    return %arg0, %c0_i32 : i32, i32
  }
  func.func @transform_1(%arg0: i32) -> (i32, i32) {
    %c0_i32 = arith.constant 0 : i32
    %c0_i32_0 = arith.constant 0 : i32
    %c0_i32_1 = arith.constant 0 : i32
    return %c0_i32, %c0_i32_0 : i32, i32
  }
  func.func @transform_2(%arg0: i32) -> (i32, i32) {
    %c0_i32 = arith.constant 0 : i32
    %c0_i32_0 = arith.constant 0 : i32
    %c0_i32_1 = arith.constant 0 : i32
    return %c0_i32, %c0_i32_0 : i32, i32
  }
  func.func @transform_3(%arg0: i32) -> (i32, i32) {
    %c0_i32 = arith.constant 0 : i32
    %c0_i32_0 = arith.constant 0 : i32
    %c0_i32_1 = arith.constant 0 : i32
    return %c0_i32, %c0_i32_0 : i32, i32
  }
  func.func @transform_4(%arg0: i32) -> (i32, i32) {
    %c0_i32 = arith.constant 0 : i32
    %c0_i32_0 = arith.constant 0 : i32
    %c0_i32_1 = arith.constant 0 : i32
    return %c0_i32, %c0_i32_0 : i32, i32
  }
  func.func @transform_5(%arg0: i32) -> (i32, i32) {
    %c0_i32 = arith.constant 0 : i32
    %c0_i32_0 = arith.constant 0 : i32
    %c0_i32_1 = arith.constant 0 : i32
    return %c0_i32, %c0_i32_0 : i32, i32
  }
  func.func @transform_6(%arg0: i32) -> (i32, i32) {
    %c0_i32 = arith.constant 0 : i32
    %c0_i32_0 = arith.constant 0 : i32
    %c0_i32_1 = arith.constant 0 : i32
    return %c0_i32, %c0_i32_0 : i32, i32
  }
  func.func @transform_7(%arg0: i32) -> (i32, i32) {
    %c0_i32 = arith.constant 0 : i32
    %c0_i32_0 = arith.constant 0 : i32
    %c0_i32_1 = arith.constant 0 : i32
    return %c0_i32, %c0_i32_0 : i32, i32
  }
  func.func @transform_8(%arg0: i32) -> (i32, i32) {
    %c0_i32 = arith.constant 0 : i32
    %c0_i32_0 = arith.constant 0 : i32
    %c0_i32_1 = arith.constant 0 : i32
    return %c0_i32, %c0_i32_0 : i32, i32
  }
  func.func @transform_9(%arg0: i32) -> (i32, i32) {
    %c0_i32 = arith.constant 0 : i32
    %c0_i32_0 = arith.constant 0 : i32
    %c0_i32_1 = arith.constant 0 : i32
    return %c0_i32, %c0_i32_0 : i32, i32
  }
  func.func @transform_10(%arg0: i32) -> (i32, i32) {
    %c0_i32 = arith.constant 0 : i32
    %c0_i32_0 = arith.constant 0 : i32
    %c0_i32_1 = arith.constant 0 : i32
    return %c0_i32, %c0_i32_0 : i32, i32
  }
  func.func @transform_11(%arg0: i32) -> (i32, i32) {
    %c0_i32 = arith.constant 0 : i32
    %c0_i32_0 = arith.constant 0 : i32
    return %arg0, %c0_i32 : i32, i32
  }
}

</mosaic_0001>

<bundles_post_ra>
// kernel: tpu_custom_call.1
= control target key start
LH: loop header
LB: loop body
LE: loop exit
PB: predicated region body
PF: predicated region fallthrough
CT: control target
= control target key end

     0   :  { %16 = vsyncpa [#allocation3], 0  ;;  %s1039_s0 = inlined_call_operand.hbm [shape: f32[8,32], index: 0, kind: input, shape index: {}]   ;;  %s1040_s1 = inlined_call_operand.hbm [shape: bf16[32,256], index: 1, kind: input, shape index: {}]   ;;  %s1041_s2 = inlined_call_operand.hbm [shape: f32[1,256], index: 2, kind: input, shape index: {}]   ;;  %s1042_s3 = inlined_call_operand.vmem [shape: f32[1,256], index: 3, kind: input, shape index: {}]   ;;  %s1043_s4 = inlined_call_operand.hbm [shape: f32[1,256], index: 4, kind: input, shape index: {}]   ;;  %s1044_s5 = inlined_call_operand.hbm [shape: bf16[256,128], index: 5, kind: input, shape index: {}]   ;;  %s1045_s6 = inlined_call_operand.vmem [shape: f32[1,128], index: 6, kind: input, shape index: {}]   ;;  %s1046_s7 = inlined_call_operand.vmem [shape: f32[1,128], index: 7, kind: input, shape index: {}]   ;;  %s1047_s8 = inlined_call_operand.vmem [shape: f32[1,128], index: 8, kind: input, shape index: {}]   ;;  %s1048_s9 = inlined_call_operand.hbm [shape: bf16[128,128], index: 9, kind: input, shape index: {}]   ;;  %s1049_s10 = inlined_call_operand.vmem [shape: f32[1,128], index: 10, kind: input, shape index: {}]   ;;  %s1050_s11 = inlined_call_operand.hbm [shape: f32[8,8], index: 11, kind: output, shape index: {}]  }
   0x1   :  { %17 = vsyncpa [#allocation6], 0 }
   0x2   :  { %18 = vsyncpa [#allocation9], 0 }
   0x3   :  { %19 = vsyncpa [#allocation12], 0  ;;  %s36_s19 = sshll.u32 %s1040_s1, 4  ;;  %s37_s19 = int_to_ptr.hbm [resolvable:$true] %s36_s19 }
   0x4   :  { %20 = vsyncpa [#allocation4], 0  ;;  %s918_s20 = smov [#allocation5]   ;;  %s63_s24 = sshll.u32 %s1043_s4, 4  ;;  %s64_s24 = int_to_ptr.hbm [resolvable:$true] %s63_s24 }
   0x5   :  { %s38_s21 = sshll.u32 %s918_s20, 4  ;;  %s919_s25 = smov 128   ;;  %s39_s21 = int_to_ptr.vmem [resolvable:$true] %s38_s21 }
   0x6   :  { %s920_s26 = smov 8   ;;  %s921_s27 = smov [#allocation8]  }
   0x7   :  { %44 = dma.hbm_to_vmem [thread:$0]  %s37_s19, 512, %s39_s21, [#allocation6], %s919_s25, %s919_s25, %s920_s26  }
   0x8   :  { %s65_s28 = sshll.u32 %s921_s27, 4  ;;  %s26_s12 = sshll.u32 %s1039_s0, 4  ;;  %s66_s28 = int_to_ptr.vmem [resolvable:$true] %s65_s28  ;;  %s27_s12 = int_to_ptr.hbm [resolvable:$true] %s26_s12 }
   0x9   :  { %68 = dma.hbm_to_vmem [thread:$0]  %s64_s24, 32, %s66_s28, [#allocation9]  }
   0xa   :  { %s50_s14 = sshll.u32 %s1041_s2, 4  ;;  %s922_s15 = smov [#allocation2]   ;;  %s51_s14 = int_to_ptr.hbm [resolvable:$true] %s50_s14 }
   0xb   :  { %s28_s16 = sshll.u32 %s922_s15, 4  ;;  %s923_s4 = smov [#allocation7]   ;;  %s29_s16 = int_to_ptr.vmem [resolvable:$true] %s28_s16 }
   0xc   :  { %31 = dma.hbm_to_vmem [thread:$0]  %s27_s12, 128, %s29_s16, [#allocation3]  }
   0xd   :  { %s52_s17 = sshll.u32 %s923_s4, 4  ;;  %s73_s20 = sshll.u32 %s1044_s5, 4  ;;  %s53_s17 = int_to_ptr.vmem [resolvable:$true] %s52_s17  ;;  %s74_s20 = int_to_ptr.hbm [resolvable:$true] %s73_s20 }
   0xe   :  { %55 = dma.hbm_to_vmem [thread:$0]  %s51_s14, 32, %s53_s17, [#allocation6]  }
   0xf   :  { %s924_s0 = smov [#allocation10]   ;;  %s92_s2 = sshll.u32 %s1048_s9, 4  ;;  %s93_s2 = int_to_ptr.hbm [resolvable:$true] %s92_s2 }
  0x10   :  { %s75_s21 = sshll.u32 %s924_s0, 4  ;;  %s925_s24 = smov 64   ;;  %s76_s21 = int_to_ptr.vmem [resolvable:$true] %s75_s21 }
  0x11   :  { %s926_s25 = smov 4   ;;  %s927_s26 = smov [#allocation11]  }
  0x12   :  { %81 = dma.hbm_to_vmem [thread:$0]  %s74_s20, 2048, %s76_s21, [#allocation9], %s925_s24, %s925_s24, %s926_s25  }
  0x13   :  { %s94_s27 = sshll.u32 %s927_s26, 4  ;;  %s95_s27 = int_to_ptr.vmem [resolvable:$true] %s94_s27 }
  0x14   :  { %100 = dma.hbm_to_vmem [thread:$0]  %s93_s2, 1024, %s95_s27, [#allocation12], %s925_s24, %s925_s24, %s926_s25  }
  0x15   :  { %908 = dma.done.wait [#allocation3], 128  }
  0x16   :  { %909 = vsyncadd [#allocation3], 4294967168 }
  0x17   :  { %910 = dma.done.wait [#allocation6], 544  }
  0x18   :  { %911 = vsyncadd [#allocation6], 4294966752 }
  0x19   :  { %912 = dma.done.wait [#allocation9], 2080  }
  0x1a   :  { %913 = vsyncadd [#allocation9], 4294965216 }
  0x1b   :  { %914 = dma.done.wait [#allocation12], 1024  }
  0x1c   :  { %915 = vsyncadd [#allocation12], 4294966272  ;;  %v579_v0 = vld [vmem:[#allocation5 + $0x10] sm:$0xf]  ;;  %v686_v1 = vld [vmem:[#allocation5 + $0x14] sm:$0xf0] }
  0x1d   :  { %v571_v2 = vld [vmem:[#allocation5] sm:$0xf]  ;;  %v580_v3 = vor.u32 %v686_v1, %v579_v0  ;;  %v684_v4 = vld [vmem:[#allocation5 + $0x4] sm:$0xf0]  ;;  %v685_v5 = vld [vmem:[#allocation5 + $0x14] sm:$0xf] }
  0x1e   :  { %v581_v6 = vld [vmem:[#allocation5 + $0x18] sm:$0xf0]  ;;  %v572_v7 = vor.u32 %v684_v4, %v571_v2  ;;  %v683_v10 = vld [vmem:[#allocation5 + $0x4] sm:$0xf]  ;;  %v573_v11 = vld [vmem:[#allocation5 + $0x8] sm:$0xf0] }
  0x1f   :  { %170 = vmatpush.bf16.msra.mxu1 %v580_v3  ;;  %v128_v8 = vld [vmem:[#allocation2] sm:$0xff]  ;;  %v584_v9 = vor.u32 %v685_v5, %v581_v6  ;;  %vm160_vm0 = vcmask 261120   ;;  %v576_v13 = vor.u32 %v683_v10, %v573_v11  ;;  %v134_v16 = vld [vmem:[#allocation7] sm:$0x3]  ;;  %v928_v27 = vmov 256.0   ;;  %v692_v34 = vld [vmem:[#allocation10 + $0x28] sm:$0xff] }
  0x20   :  { %v129_v12 = vpack.c.bf16 %v128_v8, %v128_v8  ;;  %v136_v17 = vperm.slane %v134_v16, 0  ;;  %v137_v18 = vperm.slane %v134_v16, 1  ;;  %728 = vrcp.f32 %v928_v27  ;;  %v694_v28 = vld [vmem:[#allocation10 + $0x38] sm:$0xff]  ;;  %v693_v31 = vld [vmem:[#allocation10 + $0x30] sm:$0xff]  ;;  %v700_v35 = vld [vmem:[#allocation10 + $0x68] sm:$0xff]  ;;  %s556_s15 = sshll.u32 %s1050_s11, 4  ;;  %s557_s15 = int_to_ptr.hbm [resolvable:$true] %s556_s15 }
  0x21   :  { %v702_v29 = vld [vmem:[#allocation10 + $0x78] sm:$0xff]  ;;  %381 = vmatpush.bf16.msra.mxu2 %v694_v28  ;;  %v701_v32 = vld [vmem:[#allocation10 + $0x70] sm:$0xff]  ;;  %v691_v37 = vld [vmem:[#allocation10 + $0x20] sm:$0xff]  ;;  %vm547_vm12 = vcmask 64512  }
  0x22   :  { %394 = vmatpush.bf16.msra.mxu3 %v702_v29  ;;  %v699_v38 = vld [vmem:[#allocation10 + $0x60] sm:$0xff]  ;;  %v690_v40 = vld [vmem:[#allocation10 + $0x18] sm:$0xff]  ;;  %v689_v44 = vld [vmem:[#allocation10 + $0x10] sm:$0xff]  ;;  %v929_v29 = vmov 128.0  }
  0x23   :  { %171 = vmatpush.bf16.msra.mxu1 %v572_v7  ;;  %v698_v41 = vld [vmem:[#allocation10 + $0x58] sm:$0xff]  ;;  %v697_v45 = vld [vmem:[#allocation10 + $0x50] sm:$0xff]  ;;  %v688_v47 = vld [vmem:[#allocation10 + $0x8] sm:$0xff] }
  0x24   :  { %v696_v48 = vld [vmem:[#allocation10 + $0x48] sm:$0xff]  ;;  %v687_v50 = vld [vmem:[#allocation10] sm:$0xff]  ;;  %v225_v63 = vld [vmem:[%s1042_s3] sm:$0x3] }
  0x25   :  { %382 = vmatpush.bf16.msra.mxu2 %v693_v31  ;;  %v695_v51 = vld [vmem:[#allocation10 + $0x40] sm:$0xff]  ;;  %v233_v1 = vld [vmem:[#allocation8] sm:$0x3]  ;;  %v227_v4 = vperm.slane %v225_v63, 0  ;;  %v228_v5 = vperm.slane %v225_v63, 1 }
  0x26   :  { %585 = vmatmul.msk.bf16.vlgmr.msra.gmra.mxu1 %vm160_vm0, %v129_v12  ;;  %v729_v30 = vpop.eup %728  ;;  %395 = vmatpush.bf16.msra.mxu3 %v701_v32  ;;  %v235_v8 = vperm.slane %v233_v1, 0  ;;  %v236_v10 = vperm.slane %v233_v1, 1  ;;  %v709_v32 = vld [vmem:[#allocation11 + $0x30] sm:$0xff] }
  0x27   :  { %183 = vmatpush.bf16.msrb.mxu1 %v584_v9  ;;  %v194_v33 = vmul.f32 256.0, %v729_v30  ;;  %vm198_vm1 = vweird.f32 %v729_v30 }
  0x29   :  { %v195_v36 = vsub.f32 1.0, %v194_v33  ;;  %383 = vmatpush.bf16.msra.mxu2 %v692_v34  ;;  %v708_v34 = vld [vmem:[#allocation11 + $0x28] sm:$0xff] }
  0x2a   :  { %396 = vmatpush.bf16.msra.mxu3 %v700_v35 }
  0x2b   :  { %184 = vmatpush.bf16.msrb.mxu1 %v576_v13  ;;  %v196_v39 = vmul.f32 %v729_v30, %v195_v36  ;;  %v707_v36 = vld [vmem:[#allocation11 + $0x20] sm:$0xff] }
  0x2d   :  { %384 = vmatpush.bf16.msra.mxu2 %v691_v37  ;;  %v197_v42 = vadd.f32 %v729_v30, %v196_v39 }
  0x2e   :  { %397 = vmatpush.bf16.msra.mxu3 %v699_v38  ;;  %v706_v38 = vld [vmem:[#allocation11 + $0x18] sm:$0xff] }
  0x2f   :  { %v199_v46 = vsel %vm198_vm1, %v729_v30, %v197_v42  ;;  %v710_v30 = vld [vmem:[#allocation11 + $0x38] sm:$0xff] }
  0x30   :  { %519 = vmatpush.bf16.msra.mxu0 %v710_v30 }
  0x31   :  { %385 = vmatpush.bf16.msra.mxu2 %v690_v40 }
  0x32   :  { %398 = vmatpush.bf16.msra.mxu3 %v698_v41  ;;  %v705_v41 = vld [vmem:[#allocation11 + $0x10] sm:$0xff] }
  0x34   :  { %520 = vmatpush.bf16.msra.mxu0 %v709_v32 }
  0x35   :  { %386 = vmatpush.bf16.msra.mxu2 %v689_v44 }
  0x36   :  { %586 = vmatmul.msk.bf16.vlgmr.msrb.gmra.mxu1 %vm160_vm0, %v129_v12  ;;  %399 = vmatpush.bf16.msra.mxu3 %v697_v45  ;;  %v703_v45 = vld [vmem:[#allocation11] sm:$0xff] }
  0x38   :  { %521 = vmatpush.bf16.msra.mxu0 %v708_v34 }
  0x39   :  { %387 = vmatpush.bf16.msra.mxu2 %v688_v47 }
  0x3a   :  { %400 = vmatpush.bf16.msra.mxu3 %v696_v48 }
  0x3c   :  { %522 = vmatpush.bf16.msra.mxu0 %v707_v36 }
  0x3d   :  { %388 = vmatpush.bf16.msra.mxu2 %v687_v50 }
  0x3e   :  { %401 = vmatpush.bf16.msra.mxu3 %v695_v51 }
  0x40   :  { %523 = vmatpush.bf16.msra.mxu0 %v706_v38 }
  0x44   :  { %524 = vmatpush.bf16.msra.mxu0 %v705_v41 }
  0xa3   :  { %v173_v14 = vpop.f32.mrf.mxu1 }
  0xa4   :  { %v1009_v20 = vadd.f32 %v173_v14, %v136_v17 }
  0xa6   :  { %v201_v25 = vmul.f32 %v1009_v20, %v1009_v20 }
  0xab   :  { %v175_v15 = vpop.f32.mrf.mxu1 }
  0xb3   :  { %v186_v19 = vpop.f32.mrf.mxu1 }
  0xb4   :  { %v1011_v21 = vadd.f32 %v186_v19, %v137_v18 }
  0xb6   :  { %v190_v22 = vadd.f32 %v1011_v21, %v1009_v20  ;;  %v202_v23 = vmul.f32 %v1011_v21, %v1011_v21 }
  0xb8   :  { %191 = vadd.xlane.f32.xlu0 %v190_v22  ;;  %v203_v26 = vadd.f32 %v202_v23, %v201_v25 }
  0xbb   :  { %v188_v24 = vpop.f32.mrf.mxu1 }
  0xc0   :  { %204 = vadd.xlane.f32.xlu0 %v203_v26 }
 0x12b   :  { %v192_v43 = vpop.xlane.xlu0 %191 }
 0x12c   :  { %v200_v49 = vmul.f32 %v199_v46, %v192_v43  ;;  %v704_v43 = vld [vmem:[#allocation11 + $0x8] sm:$0xff] }
 0x12d   :  { %525 = vmatpush.bf16.msra.mxu0 %v704_v43 }
 0x12e   :  { %v207_v53 = vmul.f32 %v200_v49, %v200_v49  ;;  %v210_v2 = vsub.f32 %v1009_v20, %v200_v49  ;;  %v211_v3 = vsub.f32 %v1011_v21, %v200_v49  ;;  %v724_v21 = vld [vmem:[%s1045_s6] ss:$0 sm:$0xff] }
 0x131   :  { %526 = vmatpush.bf16.msra.mxu0 %v703_v45 }
 0x133   :  { %v205_v52 = vpop.xlane.xlu0 %204 }
 0x134   :  { %v206_v54 = vmul.f32 %v205_v52, %v199_v46 }
 0x136   :  { %v208_v55 = vsub.f32 %v206_v54, %v207_v53 }
 0x138   :  { %v209_v56 = vmax.f32 %v208_v55, 0.0 }
 0x13a   :  { %v212_v57 = vadd.f32 1e-05, %v209_v56 }
 0x13c   :  { %730 = vrsqrt.f32 %v212_v57  ;;  %vm219_vm3 = vweird.f32 %v212_v57 }
 0x13d   :  { %732 = vrcp.f32 %v929_v29 }
 0x142   :  { %v731_v58 = vpop.eup %730 }
 0x143   :  { %v214_v59 = vmul.f32 %v731_v58, %v212_v57  ;;  %vm220_vm2 = vweird.f32 %v731_v58  ;;  %v733_v31 = vpop.eup %732 }
 0x144   :  { %vm221_vm4 = vmor %vm219_vm3, %vm220_vm2  ;;  %v410_v33 = vmul.f32 128.0, %v733_v31  ;;  %vm414_vm7 = vweird.f32 %v733_v31 }
 0x145   :  { %v215_v60 = vmul.f32 %v731_v58, %v214_v59  ;;  %v725_v59 = vld [vmem:[%s1046_s7] ss:$0 sm:$0xff]  ;;  %s930_s7 = smov [#allocation13]  }
 0x146   :  { %v411_v35 = vsub.f32 1.0, %v410_v33 }
 0x147   :  { %v216_v61 = vmul.f32 0.5, %v215_v60 }
 0x148   :  { %v412_v37 = vmul.f32 %v733_v31, %v411_v35 }
 0x149   :  { %v217_v62 = vsub.f32 1.5, %v216_v61 }
 0x14a   :  { %v413_v39 = vadd.f32 %v733_v31, %v412_v37 }
 0x14b   :  { %v218_v0 = vmul.f32 %v731_v58, %v217_v62  ;;  %v726_v62 = vld [vmem:[%s1047_s8] ss:$0 sm:$0xff]  ;;  %s554_s8 = sshll.u32 %s930_s7, 4  ;;  %s555_s8 = int_to_ptr.vmem [resolvable:$true] %s554_s8 }
 0x14c   :  { %v415_v42 = vsel %vm414_vm7, %v733_v31, %v413_v39 }
 0x14d   :  { %v222_v6 = vsel %vm221_vm4, %v731_v58, %v218_v0 }
 0x14e   :  { %v223_v7 = vmul.f32 %v222_v6, %v210_v2  ;;  %v224_v9 = vmul.f32 %v222_v6, %v211_v3 }
 0x150   :  { %v231_v11 = vmul.f32 %v227_v4, %v223_v7  ;;  %v232_v12 = vmul.f32 %v228_v5, %v224_v9  ;;  %v727_v4 = vld [vmem:[%s1049_s10] ss:$0 sm:$0xff] }
 0x152   :  { %v239_v13 = vadd.f32 %v235_v8, %v231_v11  ;;  %v240_v14 = vadd.f32 %v236_v10, %v232_v12 }
 0x154   :  { %vm241_vm5 = vcmp.ge.f32.partialorder %v239_v13, 0.0  ;;  %v243_v15 = vmul.f32 0.01, %v239_v13  ;;  %vm242_vm6 = vcmp.ge.f32.partialorder %v240_v14, 0.0  ;;  %v244_v16 = vmul.f32 0.01, %v240_v14 }
 0x156   :  { %v245_v17 = vsel %vm241_vm5, %v239_v13, %v243_v15  ;;  %v246_v18 = vsel %vm242_vm6, %v240_v14, %v244_v16 }
 0x157   :  { %v247_v19 = vpack.c.bf16 %v245_v17, %v245_v17  ;;  %v248_v20 = vpack.c.bf16 %v246_v18, %v246_v18 }
 0x159   :  { %389 = vmatmul.bf16.vlgmr.msra.gmra.mxu2 %v247_v19  ;;  %402 = vmatmul.bf16.vlgmr.msra.gmra.mxu3 %v248_v20 }
 0x1dc   :  { %v390_v22 = vpop.f32.mrf.mxu2  ;;  %v403_v23 = vpop.f32.mrf.mxu3 }
 0x1dd   :  { %v391_v24 = vadd.f32 %v724_v21, %v390_v22 }
 0x1df   :  { %v404_v25 = vadd.f32 %v403_v23, %v391_v24 }
 0x1e1   :  { %407 = vadd.xlane.f32.xlu1 %v404_v25  ;;  %v417_v28 = vmul.f32 %v404_v25, %v404_v25 }
 0x1e4   :  { %v392_v26 = vpop.f32.mrf.mxu2  ;;  %v405_v27 = vpop.f32.mrf.mxu3 }
 0x1e9   :  { %418 = vadd.xlane.f32.xlu1 %v417_v28 }
 0x254   :  { %v408_v40 = vpop.xlane.xlu1 %407 }
 0x255   :  { %v416_v44 = vmul.f32 %v415_v42, %v408_v40 }
 0x257   :  { %v421_v47 = vmul.f32 %v416_v44, %v416_v44  ;;  %v424_v58 = vsub.f32 %v404_v25, %v416_v44 }
 0x25c   :  { %v419_v46 = vpop.xlane.xlu1 %418 }
 0x25d   :  { %v420_v48 = vmul.f32 %v419_v46, %v415_v42 }
 0x25f   :  { %v422_v49 = vsub.f32 %v420_v48, %v421_v47 }
 0x261   :  { %v423_v50 = vmax.f32 %v422_v49, 0.0 }
 0x263   :  { %v425_v51 = vadd.f32 1e-05, %v423_v50 }
 0x265   :  { %734 = vrsqrt.f32 %v425_v51  ;;  %vm432_vm9 = vweird.f32 %v425_v51 }
 0x26b   :  { %v735_v52 = vpop.eup %734 }
 0x26c   :  { %v427_v53 = vmul.f32 %v735_v52, %v425_v51  ;;  %vm433_vm8 = vweird.f32 %v735_v52 }
 0x26d   :  { %vm434_vm10 = vmor %vm432_vm9, %vm433_vm8 }
 0x26e   :  { %v428_v54 = vmul.f32 %v735_v52, %v427_v53 }
 0x270   :  { %v429_v55 = vmul.f32 0.5, %v428_v54 }
 0x272   :  { %v430_v56 = vsub.f32 1.5, %v429_v55 }
 0x274   :  { %v431_v57 = vmul.f32 %v735_v52, %v430_v56 }
 0x276   :  { %v435_v60 = vsel %vm434_vm10, %v735_v52, %v431_v57 }
 0x277   :  { %v436_v61 = vmul.f32 %v435_v60, %v424_v58 }
 0x279   :  { %v441_v63 = vmul.f32 %v725_v59, %v436_v61 }
 0x27b   :  { %v446_v0 = vadd.f32 %v726_v62, %v441_v63 }
 0x27d   :  { %vm447_vm11 = vcmp.ge.f32.partialorder %v446_v0, 0.0  ;;  %v448_v1 = vmul.f32 0.01, %v446_v0 }
 0x27f   :  { %v449_v2 = vsel %vm447_vm11, %v446_v0, %v448_v1 }
 0x280   :  { %v450_v3 = vpack.c.bf16 %v449_v2, %v449_v2 }
 0x282   :  { %527 = vmatmul.bf16.vlgmr.msra.gmra.mxu0 %v450_v3 }
 0x2ff   :  { %v528_v5 = vpop.f32.mrf.mxu0 }
 0x300   :  { %v529_v6 = vadd.f32 %v727_v4, %v528_v5 }
 0x302   :  { %532 = vmax.xlane.f32.xlu2 %v529_v6 }
 0x307   :  { %v530_v7 = vpop.f32.mrf.mxu0 }
 0x375   :  { %v533_v8 = vpop.xlane.xlu2 %532 }
 0x376   :  { %v534_v9 = vsub.f32 %v529_v6, %v533_v8 }
 0x378   :  { %v535_v10 = vmul.f32 1.442695, %v534_v9 }
 0x37a   :  { %736 = vpow2.f32 %v535_v10 }
 0x380   :  { %v737_v11 = vpop.eup %736 }
 0x381   :  { %537 = vadd.xlane.f32.xlu2 %v737_v11 }
 0x3f4   :  { %v538_v12 = vpop.xlane.xlu2 %537 }
 0x3f5   :  { %v539_v13 = vmul.f32 1.0000001, %v538_v12  ;;  %v544_v16 = vmul.f32 1e-08, %v538_v12 }
 0x3f7   :  { %738 = vrcp.f32 %v539_v13  ;;  %v545_v19 = vadd.f32 %v737_v11, %v544_v16 }
 0x3fd   :  { %v739_v14 = vpop.eup %738 }
 0x3fe   :  { %v541_v15 = vmul.f32 %v739_v14, %v539_v13 }
 0x400   :  { %v542_v17 = vsub.f32 2.0, %v541_v15 }
 0x402   :  { %v543_v18 = vmul.f32 %v739_v14, %v542_v17 }
 0x404   :  { %v546_v20 = vmul.f32 %v545_v19, %v543_v18 }
 0x406   :  { %548 = vst.msk [vmem:[#allocation13] sm:$0xff] %vm547_vm12, %v546_v20 }
 0x407   :  { %559 = dma.vmem_to_hbm [thread:$0]  %s555_s8, 128, %s557_s15, [#allocation4]  }
 0x408   :  { %916 = dma.done.wait [#allocation4], 128  }
 0x409   :  { %917 = vsyncadd [#allocation4], 4294967168 }
 0x40a   :  { %564 = vsyncpa [#allocation3], 1 }
 0x40b   :  { %565 = vsyncpa [#allocation6], 1 }
 0x40c   :  { %566 = vsyncpa [#allocation9], 1 }
 0x40d   :  { %567 = vsyncpa [#allocation12], 1 }
 0x40e   :  { %568 = vsyncpa [#allocation4], 1 }

</bundles_post_ra>
